<compile_context>
chip_gen: v7x
topology: tpu7x:2x2x1
jax: 0.10.0
libtpu: 0.0.40
codegen_flags: <defaults>
</compile_context>

<pallas_src>
import jax
import jax.numpy as jnp
from jax.experimental import pallas as pl
from jax.experimental.pallas import tpu as pltpu


def mlp_kernel(x_ref, w1_ref, b1_ref, w2_ref, b2_ref,
               w3m_ref, b3m_ref, w3v_ref, b3v_ref,
               mean_ref, logvar_ref):
    # Layer 1: Linear + ReLU
    h1 = jnp.dot(x_ref[...], w1_ref[...], preferred_element_type=jnp.float32)
    h1 = jnp.maximum(h1 + b1_ref[...], 0.0)
    # Layer 2: Linear + ReLU
    h2 = jnp.dot(h1, w2_ref[...], preferred_element_type=jnp.float32)
    h2 = jnp.maximum(h2 + b2_ref[...], 0.0)
    # Layer 3: two lane-aligned projections (mean / log_var) sharing the same LHS
    mean = jnp.dot(h2, w3m_ref[...], preferred_element_type=jnp.float32) + b3m_ref[...]
    lvar = jnp.dot(h2, w3v_ref[...], preferred_element_type=jnp.float32) + b3v_ref[...]
    mean_ref[...] = mean.astype(mean_ref.dtype)
    logvar_ref[...] = jnp.maximum(lvar, -5.0).astype(logvar_ref.dtype)


def mlp_network_forward(x, params, state_dim, *, tile_b=1024):
    """x: [B, state_dim + action_dim] -> (mean [B, state_dim+1], log_var [B, state_dim+1]).

    tile_b: batch-tile size. Kept modest by default so (x tile + 2 output tiles
    + resident weights) * 2 (double buffering) stays far under v7x's 64 MiB VMEM
    while still amortizing per-grid-step overhead on v5e/v6e.
    """
    w1, b1, w2, b2, w3, b3 = params
    B, in_dim = x.shape
    s1 = state_dim + 1

    # Split final projection host-side so each kernel output is lane-0 aligned.
    w3m, w3v = w3[:, :s1], w3[:, s1:]
    b3m, b3v = b3[:, :s1], b3[:, s1:]

    # Batch tile: multiple of 8 (sublane), no larger than the (rounded-up) batch.
    tb = min(tile_b, max(8, ((B + 7) // 8) * 8))
    Bp = ((B + tb - 1) // tb) * tb
    if Bp != B:
        x = jnp.pad(x, ((0, Bp - B), (0, 0)))

    grid = (Bp // tb,)

    def resident(arr):
        # Full-array block with a constant block index -> stays in VMEM, fetched once.
        return pl.BlockSpec(arr.shape, lambda i: (0, 0))

    mean, log_var = pl.pallas_call(
        mlp_kernel,
        out_shape=(
            jax.ShapeDtypeStruct((Bp, s1), jnp.float32),
            jax.ShapeDtypeStruct((Bp, s1), jnp.float32),
        ),
        grid=grid,
        in_specs=[
            pl.BlockSpec((tb, in_dim), lambda i: (i, 0)),   # x: batch-tiled
            resident(w1), resident(b1),
            resident(w2), resident(b2),
            resident(w3m), resident(b3m),
            resident(w3v), resident(b3v),
        ],
        out_specs=(
            pl.BlockSpec((tb, s1), lambda i: (i, 0)),
            pl.BlockSpec((tb, s1), lambda i: (i, 0)),
        ),
        compiler_params=pltpu.CompilerParams(
            dimension_semantics=("parallel",),
        ),
    )(x, w1, b1, w2, b2, w3m, b3m, w3v, b3v)

    return mean[:B], log_var[:B]


def init_params(key, state_dim, action_dim, hidden_dim):
    """Deterministic init matching the shapes of the PyTorch module.

    Weights are stored as [in, out] (transpose of torch's [out, in]); biases as
    [1, out] so they stay 2-D for TPU layout.
    """
    in_dim = state_dim + action_dim
    out_dim = 2 * (state_dim + 1)
    dims = [(in_dim, hidden_dim), (hidden_dim, hidden_dim), (hidden_dim, out_dim)]
    params = []
    keys = jax.random.split(key, 2 * len(dims))
    for i, (fan_in, fan_out) in enumerate(dims):
        bound = 1.0 / jnp.sqrt(float(fan_in))
        w = jax.random.uniform(keys[2 * i], (fan_in, fan_out),
                               minval=-bound, maxval=bound, dtype=jnp.float32)
        b = jax.random.uniform(keys[2 * i + 1], (1, fan_out),
                               minval=-bound, maxval=bound, dtype=jnp.float32)
        params += [w, b]
    return tuple(params)


def reference_forward(x, params, state_dim):
    """Plain-JAX reference for correctness check."""
    w1, b1, w2, b2, w3, b3 = params
    h1 = jnp.maximum(x @ w1 + b1, 0.0)
    h2 = jnp.maximum(h1 @ w2 + b2, 0.0)
    out = h2 @ w3 + b3
    s1 = state_dim + 1
    return out[:, :s1], jnp.maximum(out[:, s1:], -5.0)


def _check(x, params, state_dim, **kw):
    mean, log_var = mlp_network_forward(x, params, state_dim, **kw)
    jax.block_until_ready((mean, log_var))
    mean_ref, logvar_ref = reference_forward(x, params, state_dim)
    s1 = state_dim + 1
    assert mean.shape == (x.shape[0], s1)
    assert log_var.shape == (x.shape[0], s1)
    assert jnp.allclose(mean, mean_ref, atol=1e-5, rtol=1e-5)
    assert jnp.allclose(log_var, logvar_ref, atol=1e-5, rtol=1e-5)
    assert bool(jnp.all(log_var >= -5.0))


if __name__ == "__main__":
    state_dim = 4
    action_dim = 3
    hidden_dim = 32

    key = jax.random.PRNGKey(0)
    k_params, k_x1, k_x2 = jax.random.split(key, 3)
    params = init_params(k_params, state_dim, action_dim, hidden_dim)

    # Small batch (single grid step).
    x_small = jax.random.normal(k_x1, (8, state_dim + action_dim), dtype=jnp.float32)
    _check(x_small, params, state_dim)

    # Larger, non-multiple batch: exercises the batch grid (3 steps), resident
    # weights, and the pad/slice path.
    x_big = jax.random.normal(k_x2, (300, state_dim + action_dim), dtype=jnp.float32)
    _check(x_big, params, state_dim, tile_b=128)

    # TODO(synk): outputs are width-(state_dim+1) masked stores; if the caller's
    # layout is negotiable, padding the output width to 128 lanes would make the
    # writebacks unmasked (small absolute win at these sizes).
    print("KERNEL_OK")
</pallas_src>

<mosaic_0001>
module attributes {stable_mosaic.version = 11 : i64} {
  func.func @mlp_kernel(%arg0: i32, %arg1: memref<8x7xf32, #tpu.memory_space<vmem>>, %arg2: memref<7x32xf32, #tpu.memory_space<vmem>>, %arg3: memref<1x32xf32, #tpu.memory_space<vmem>>, %arg4: memref<32x32xf32, #tpu.memory_space<vmem>>, %arg5: memref<1x32xf32, #tpu.memory_space<vmem>>, %arg6: memref<32x5xf32, #tpu.memory_space<vmem>>, %arg7: memref<1x5xf32, #tpu.memory_space<vmem>>, %arg8: memref<32x5xf32, #tpu.memory_space<vmem>>, %arg9: memref<1x5xf32, #tpu.memory_space<vmem>>, %arg10: memref<8x5xf32, #tpu.memory_space<vmem>>, %arg11: memref<8x5xf32, #tpu.memory_space<vmem>>) attributes {dimension_semantics = [#tpu.dimension_semantics<parallel>], iteration_bounds = array<i64: 1>, scalar_prefetch = 0 : i64, scratch_operands = 0 : i64, tpu.core_type = #tpu.core_type<tc>, window_params = [{transform_indices = @transform_0, window_bounds = array<i64: 8, 7>}, {pipeline_mode = #tpu.pipeline_mode<synchronous>, transform_indices = @transform_1, window_bounds = array<i64: 7, 32>}, {pipeline_mode = #tpu.pipeline_mode<synchronous>, transform_indices = @transform_2, window_bounds = array<i64: 1, 32>}, {pipeline_mode = #tpu.pipeline_mode<synchronous>, transform_indices = @transform_3, window_bounds = array<i64: 32, 32>}, {pipeline_mode = #tpu.pipeline_mode<synchronous>, transform_indices = @transform_4, window_bounds = array<i64: 1, 32>}, {pipeline_mode = #tpu.pipeline_mode<synchronous>, transform_indices = @transform_5, window_bounds = array<i64: 32, 5>}, {pipeline_mode = #tpu.pipeline_mode<synchronous>, transform_indices = @transform_6, window_bounds = array<i64: 1, 5>}, {pipeline_mode = #tpu.pipeline_mode<synchronous>, transform_indices = @transform_7, window_bounds = array<i64: 32, 5>}, {pipeline_mode = #tpu.pipeline_mode<synchronous>, transform_indices = @transform_8, window_bounds = array<i64: 1, 5>}, {transform_indices = @transform_9, window_bounds = array<i64: 8, 5>}, {transform_indices = @transform_10, window_bounds = array<i64: 8, 5>}]} {
    %c0 = arith.constant 0 : index
    %c0_0 = arith.constant 0 : index
    %0 = vector.load %arg1[%c0, %c0_0] : memref<8x7xf32, #tpu.memory_space<vmem>>, vector<8x7xf32>
    %c0_1 = arith.constant 0 : index
    %c0_2 = arith.constant 0 : index
    %1 = vector.load %arg2[%c0_1, %c0_2] : memref<7x32xf32, #tpu.memory_space<vmem>>, vector<7x32xf32>
    %cst = arith.constant dense<0.000000e+00> : vector<8x32xf32>
    %2 = tpu.matmul %0, %1, %cst {dimension_numbers = #tpu.dot_dimension_numbers<[1], [0], [0], [1], [0, 0, 1, 1], [], []>} : vector<8x7xf32>, vector<7x32xf32>, vector<8x32xf32> -> vector<8x32xf32>
    %c0_3 = arith.constant 0 : index
    %c0_4 = arith.constant 0 : index
    %3 = vector.load %arg3[%c0_3, %c0_4] : memref<1x32xf32, #tpu.memory_space<vmem>>, vector<1x32xf32>
    %4 = vector.broadcast %3 : vector<1x32xf32> to vector<8x32xf32>
    %5 = arith.addf %2, %4 : vector<8x32xf32>
    %cst_5 = arith.constant 0.000000e+00 : f32
    %6 = vector.broadcast %cst_5 : f32 to vector<8x32xf32>
    %7 = arith.maximumf %5, %6 : vector<8x32xf32>
    %c0_6 = arith.constant 0 : index
    %c0_7 = arith.constant 0 : index
    %8 = vector.load %arg4[%c0_6, %c0_7] : memref<32x32xf32, #tpu.memory_space<vmem>>, vector<32x32xf32>
    %cst_8 = arith.constant dense<0.000000e+00> : vector<8x32xf32>
    %9 = tpu.matmul %7, %8, %cst_8 {dimension_numbers = #tpu.dot_dimension_numbers<[1], [0], [0], [1], [0, 0, 1, 1], [], []>} : vector<8x32xf32>, vector<32x32xf32>, vector<8x32xf32> -> vector<8x32xf32>
    %c0_9 = arith.constant 0 : index
    %c0_10 = arith.constant 0 : index
    %10 = vector.load %arg5[%c0_9, %c0_10] : memref<1x32xf32, #tpu.memory_space<vmem>>, vector<1x32xf32>
    %11 = vector.broadcast %10 : vector<1x32xf32> to vector<8x32xf32>
    %12 = arith.addf %9, %11 : vector<8x32xf32>
    %cst_11 = arith.constant 0.000000e+00 : f32
    %13 = vector.broadcast %cst_11 : f32 to vector<8x32xf32>
    %14 = arith.maximumf %12, %13 : vector<8x32xf32>
    %c0_12 = arith.constant 0 : index
    %c0_13 = arith.constant 0 : index
    %15 = vector.load %arg6[%c0_12, %c0_13] : memref<32x5xf32, #tpu.memory_space<vmem>>, vector<32x5xf32>
    %cst_14 = arith.constant dense<0.000000e+00> : vector<8x5xf32>
    %16 = tpu.matmul %14, %15, %cst_14 {dimension_numbers = #tpu.dot_dimension_numbers<[1], [0], [0], [1], [0, 0, 1, 1], [], []>} : vector<8x32xf32>, vector<32x5xf32>, vector<8x5xf32> -> vector<8x5xf32>
    %c0_15 = arith.constant 0 : index
    %c0_16 = arith.constant 0 : index
    %17 = vector.load %arg7[%c0_15, %c0_16] : memref<1x5xf32, #tpu.memory_space<vmem>>, vector<1x5xf32>
    %18 = vector.broadcast %17 : vector<1x5xf32> to vector<8x5xf32>
    %19 = arith.addf %16, %18 : vector<8x5xf32>
    %c0_17 = arith.constant 0 : index
    %c0_18 = arith.constant 0 : index
    %20 = vector.load %arg8[%c0_17, %c0_18] : memref<32x5xf32, #tpu.memory_space<vmem>>, vector<32x5xf32>
    %cst_19 = arith.constant dense<0.000000e+00> : vector<8x5xf32>
    %21 = tpu.matmul %14, %20, %cst_19 {dimension_numbers = #tpu.dot_dimension_numbers<[1], [0], [0], [1], [0, 0, 1, 1], [], []>} : vector<8x32xf32>, vector<32x5xf32>, vector<8x5xf32> -> vector<8x5xf32>
    %c0_20 = arith.constant 0 : index
    %c0_21 = arith.constant 0 : index
    %22 = vector.load %arg9[%c0_20, %c0_21] : memref<1x5xf32, #tpu.memory_space<vmem>>, vector<1x5xf32>
    %23 = vector.broadcast %22 : vector<1x5xf32> to vector<8x5xf32>
    %24 = arith.addf %21, %23 : vector<8x5xf32>
    %c0_22 = arith.constant 0 : index
    %c0_23 = arith.constant 0 : index
    %25 = vector.load %arg10[%c0_22, %c0_23] : memref<8x5xf32, #tpu.memory_space<vmem>>, vector<8x5xf32>
    tpu.vector_store %arg10[%c0_22, %c0_23], %19 {strides = array<i32>} : memref<8x5xf32, #tpu.memory_space<vmem>>, vector<8x5xf32>,
    %cst_24 = arith.constant -5.000000e+00 : f32
    %26 = vector.broadcast %cst_24 : f32 to vector<8x5xf32>
    %27 = arith.maximumf %24, %26 : vector<8x5xf32>
    %c0_25 = arith.constant 0 : index
    %c0_26 = arith.constant 0 : index
    %28 = vector.load %arg11[%c0_25, %c0_26] : memref<8x5xf32, #tpu.memory_space<vmem>>, vector<8x5xf32>
    tpu.vector_store %arg11[%c0_25, %c0_26], %27 {strides = array<i32>} : memref<8x5xf32, #tpu.memory_space<vmem>>, vector<8x5xf32>,
    return
  }
  func.func @transform_0(%arg0: i32) -> (i32, i32) {
    %c0_i32 = arith.constant 0 : i32
    %c0_i32_0 = arith.constant 0 : i32
    return %arg0, %c0_i32 : i32, i32
  }
  func.func @transform_1(%arg0: i32) -> (i32, i32) {
    %c0_i32 = arith.constant 0 : i32
    %c0_i32_0 = arith.constant 0 : i32
    %c0_i32_1 = arith.constant 0 : i32
    return %c0_i32, %c0_i32_0 : i32, i32
  }
  func.func @transform_2(%arg0: i32) -> (i32, i32) {
    %c0_i32 = arith.constant 0 : i32
    %c0_i32_0 = arith.constant 0 : i32
    %c0_i32_1 = arith.constant 0 : i32
    return %c0_i32, %c0_i32_0 : i32, i32
  }
  func.func @transform_3(%arg0: i32) -> (i32, i32) {
    %c0_i32 = arith.constant 0 : i32
    %c0_i32_0 = arith.constant 0 : i32
    %c0_i32_1 = arith.constant 0 : i32
    return %c0_i32, %c0_i32_0 : i32, i32
  }
  func.func @transform_4(%arg0: i32) -> (i32, i32) {
    %c0_i32 = arith.constant 0 : i32
    %c0_i32_0 = arith.constant 0 : i32
    %c0_i32_1 = arith.constant 0 : i32
    return %c0_i32, %c0_i32_0 : i32, i32
  }
  func.func @transform_5(%arg0: i32) -> (i32, i32) {
    %c0_i32 = arith.constant 0 : i32
    %c0_i32_0 = arith.constant 0 : i32
    %c0_i32_1 = arith.constant 0 : i32
    return %c0_i32, %c0_i32_0 : i32, i32
  }
  func.func @transform_6(%arg0: i32) -> (i32, i32) {
    %c0_i32 = arith.constant 0 : i32
    %c0_i32_0 = arith.constant 0 : i32
    %c0_i32_1 = arith.constant 0 : i32
    return %c0_i32, %c0_i32_0 : i32, i32
  }
  func.func @transform_7(%arg0: i32) -> (i32, i32) {
    %c0_i32 = arith.constant 0 : i32
    %c0_i32_0 = arith.constant 0 : i32
    %c0_i32_1 = arith.constant 0 : i32
    return %c0_i32, %c0_i32_0 : i32, i32
  }
  func.func @transform_8(%arg0: i32) -> (i32, i32) {
    %c0_i32 = arith.constant 0 : i32
    %c0_i32_0 = arith.constant 0 : i32
    %c0_i32_1 = arith.constant 0 : i32
    return %c0_i32, %c0_i32_0 : i32, i32
  }
  func.func @transform_9(%arg0: i32) -> (i32, i32) {
    %c0_i32 = arith.constant 0 : i32
    %c0_i32_0 = arith.constant 0 : i32
    return %arg0, %c0_i32 : i32, i32
  }
  func.func @transform_10(%arg0: i32) -> (i32, i32) {
    %c0_i32 = arith.constant 0 : i32
    %c0_i32_0 = arith.constant 0 : i32
    return %arg0, %c0_i32 : i32, i32
  }
}

</mosaic_0001>

<bundles_post_ra>
// kernel: tpu_custom_call.1
= control target key start
LH: loop header
LB: loop body
LE: loop exit
PB: predicated region body
PF: predicated region fallthrough
CT: control target
= control target key end

     0   :  { %16 = vsyncpa [#allocation3], 0  ;;  %vm49_vm0 = vcmask 1046528   ;;  %v542_v2 = vmov 0.0   ;;  %vm543_vm1 = vmmov 0   ;;  %vm45_vm2 = vcmask 56320   ;;  %s689_s0 = inlined_call_operand.vmem [shape: f32[8,7], index: 0, kind: input, shape index: {}]   ;;  %s690_s1 = inlined_call_operand.vmem [shape: f32[7,32], index: 1, kind: input, shape index: {}]   ;;  %s691_s2 = inlined_call_operand.vmem [shape: f32[1,32], index: 2, kind: input, shape index: {}]   ;;  %s692_s3 = inlined_call_operand.vmem [shape: f32[32,32], index: 3, kind: input, shape index: {}]   ;;  %s693_s4 = inlined_call_operand.vmem [shape: f32[1,32], index: 4, kind: input, shape index: {}]   ;;  %s694_s5 = inlined_call_operand.vmem [shape: f32[32,5], index: 5, kind: input, shape index: {}]   ;;  %s695_s6 = inlined_call_operand.vmem [shape: f32[1,5], index: 6, kind: input, shape index: {}]   ;;  %s696_s7 = inlined_call_operand.vmem [shape: f32[32,5], index: 7, kind: input, shape index: {}]   ;;  %s697_s8 = inlined_call_operand.vmem [shape: f32[1,5], index: 8, kind: input, shape index: {}]   ;;  %s698_s9 = inlined_call_operand.hbm [shape: f32[8,5], index: 9, kind: output, shape index: {0}]   ;;  %s699_s10 = inlined_call_operand.hbm [shape: f32[8,5], index: 10, kind: output, shape index: {1}]  }
   0x1   :  { %v37_v0 = vld [vmem:[%s690_s1] sm:$0x7f]  ;;  %433 = vmatprep.subr.mxu0 %v542_v2  ;;  %435 = vmatprep.mubr.msk.f32.mxu0 %vm543_vm1, %v542_v2  ;;  %v125_v4 = vld [vmem:[%s692_s3 + $0x8] sm:$0xff]  ;;  %v544_v5 = vmov 0.0|0.0  }
   0x2   :  { %v36_v1 = vld [vmem:[%s689_s0] sm:$0xff]  ;;  %434 = vmatpush3.msk.msra.mxu0 %vm49_vm0, %v37_v0  ;;  %471 = vmatprep.subr.bf16.mxu1 %v544_v5 }
   0x3   :  { %v124_v3 = vld [vmem:[%s692_s3] sm:$0xff] }
   0x4   :  { %v472_v6 = vpack.c.bf16 %v125_v4, %v124_v3 }
   0x5   :  { %17 = vsyncpa [#allocation5], 0  ;;  %436 = vmatmul.mubr.msk.f32.vlgmr.msra.gmra.mrb[0].mxu0 %vm45_vm2, %v36_v1  ;;  %446 = vmatprep.mubr.msk.f32.mxu1 %vm543_vm1, %v542_v2  ;;  %v126_v7 = vld [vmem:[%s692_s3 + $0x10] sm:$0xff]  ;;  %v127_v8 = vld [vmem:[%s692_s3 + $0x18] sm:$0xff]  ;;  %vm135_vm3 = vcmask 261120   ;;  %s545_s21 = smov [#allocation2]  }
   0x6   :  { %473 = vmatpush3.bf16.msra.mxu1 %v472_v6  ;;  %477 = vmatprep.subr.bf16.mxu0 %v544_v5  ;;  %v475_v9 = vpack.c.bf16 %v127_v8, %v126_v7  ;;  %v210_v10 = vld [vmem:[%s694_s5] sm:$0xff]  ;;  %v211_v11 = vld [vmem:[%s694_s5 + $0x8] sm:$0xff]  ;;  %v212_v21 = vld [vmem:[%s694_s5 + $0x10] sm:$0xff]  ;;  %s385_s22 = sshll.u32 %s545_s21, 4  ;;  %vm375_vm4 = vcmask 39936   ;;  %s386_s22 = int_to_ptr.vmem [resolvable:$true] %s385_s22 }
   0x7   :  { %474 = vmatprep.subr.bf16.mxu1 %v544_v5  ;;  %457 = vmatprep.mubr.msk.f32.mxu0 %vm543_vm1, %v542_v2  ;;  %v478_v12 = vpack.c.bf16 %v211_v11, %v210_v10  ;;  %v407_v13 = vld [vmem:[%s691_s2] ss:$0 sm:$0xff]  ;;  %v295_v15 = vld [vmem:[%s696_s7 + $0x8] sm:$0xff]  ;;  %v213_v22 = vld [vmem:[%s694_s5 + $0x18] sm:$0xff]  ;;  %p499_p1 = scmp.lt.s32.totalorder %s386_s22, %s386_s22 }
   0x8   :  { %v294_v14 = vld [vmem:[%s696_s7] sm:$0xff]  ;;  %v296_v23 = vld [vmem:[%s696_s7 + $0x10] sm:$0xff]  ;;  %v481_v24 = vpack.c.bf16 %v213_v22, %v212_v21  ;;  %v297_v25 = vld [vmem:[%s696_s7 + $0x18] sm:$0xff] }
   0x9   :  { %479 = vmatpush3.bf16.msra.mxu0 %v478_v12  ;;  %v484_v19 = vpack.c.bf16 %v295_v15, %v294_v14  ;;  %v487_v26 = vpack.c.bf16 %v297_v25, %v296_v23  ;;  %v410_v27 = vld [vmem:[%s693_s4] ss:$0 sm:$0xff]  ;;  %s546_s4 = smov [#allocation4]  }
   0xa   :  { %476 = vmatpush3.bf16.msra.mxu1 %v475_v9  ;;  %480 = vmatprep.subr.bf16.mxu0 %v544_v5  ;;  %v412_v32 = vld [vmem:[%s695_s6] ss:$0 sm:$0xff]  ;;  %s395_s23 = sshll.u32 %s546_s4, 4  ;;  %s494_s6 = scalar_lea.vmem %s386_s22, 128  ;;  %s396_s23 = int_to_ptr.vmem [resolvable:$true] %s395_s23 }
   0xb   :  { %483 = vmatprep.subr.bf16.mxu1 %v544_v5  ;;  %v414_v33 = vld [vmem:[%s697_s8] ss:$0 sm:$0xff]  ;;  %p495_p0 = scmp.ne.s32.totalorder %s386_s22, %s494_s6  ;;  %p500_p2 = scmp.lt.s32.totalorder %s494_s6, %s494_s6 }
   0xd   :  { %482 = vmatpush3.bf16.msra.mxu0 %v481_v24  ;;  %p501_p3 = por %p500_p2, %p499_p1 }
   0xf   :  { %p502_p4 = pnand %p501_p3, %p495_p0 }
  0xd8   :  { %v119_v16 = vpop.f32.mrb[0].mxu0 }
  0xd9   :  { %v120_v17 = vadd.f32 %v407_v13, %v119_v16  ;;  %v437_v18 = vpop.f32.mrb[1].mxu0 }
  0xdb   :  { %v123_v20 = vmax.f32 %v120_v17, 0.0 }
  0xdd   :  { %447 = vmatmul.mubr.msk.f32.vlgmr.msra.gmra.mrb[0].mxu1 %vm135_vm3, %v123_v20 }
  0xde   :  { %485 = vmatpush3.bf16.msra.mxu1 %v484_v19  ;;  %468 = vmatprep.mubr.msk.f32.mxu1 %vm543_vm1, %v542_v2 }
  0xdf   :  { %486 = vmatprep.subr.bf16.mxu1 %v544_v5 }
  0xe2   :  { %488 = vmatpush3.bf16.msra.mxu1 %v487_v26 }
 0x1b0   :  { %v205_v28 = vpop.f32.mrb[0].mxu1 }
 0x1b1   :  { %v206_v29 = vadd.f32 %v410_v27, %v205_v28  ;;  %v448_v30 = vpop.f32.mrb[1].mxu1 }
 0x1b3   :  { %v209_v31 = vmax.f32 %v206_v29, 0.0 }
 0x1b5   :  { %458 = vmatmul.mubr.msk.f32.vlgmr.msra.gmra.mrb[2].mxu0 %vm135_vm3, %v209_v31  ;;  %469 = vmatmul.mubr.msk.f32.vlgmr.msra.gmra.mrb[2].mxu1 %vm135_vm3, %v209_v31 }
 0x288   :  { %v290_v34 = vpop.f32.mrb[2].mxu0  ;;  %v371_v35 = vpop.f32.mrb[2].mxu1 }
 0x289   :  { %v291_v36 = vadd.f32 %v412_v32, %v290_v34  ;;  %v372_v37 = vadd.f32 %v414_v33, %v371_v35  ;;  %v459_v38 = vpop.f32.mrb[3].mxu0  ;;  %v470_v39 = vpop.f32.mrb[3].mxu1 }
 0x28b   :  { %v377_v40 = vmax.f32 %v372_v37, -5.0  ;;  %376 = vst.msk [vmem:[#allocation2] sm:$0xff] %vm375_vm4, %v291_v36 }
 0x28c   :  { %505 = shalt.err (!%p502_p4)
}
 0x28d   :  { %s506_s25 = scalar_lea.hbm %s698_s9, 128 }
 0x28e   :  { %p507_p5 = scmp.ne.s32.totalorder %s698_s9, %s506_s25  ;;  %p510_p6 = scmp.lt.u32.totalorder %s506_s25, %s698_s9 }
 0x290   :  { %p512_p7 = pnand %p510_p6, %p507_p5 }
 0x292   :  { %515 = shalt.err (!%p512_p7)
}
 0x293   :  { %388 = dma.vmem_to_hbm [thread:$0]  %s386_s22, 128, %s698_s9, [#allocation3]   ;;  %378 = vst.msk [vmem:[#allocation4] sm:$0xff] %vm375_vm4, %v377_v40 }
 0x294   :  { %s516_s11 = scalar_lea.vmem %s396_s23, 128  ;;  %p521_p9 = scmp.lt.s32.totalorder %s396_s23, %s396_s23 }
 0x295   :  { %p517_p8 = scmp.ne.s32.totalorder %s396_s23, %s516_s11  ;;  %p522_p10 = scmp.lt.s32.totalorder %s516_s11, %s516_s11 }
 0x297   :  { %p523_p11 = por %p522_p10, %p521_p9 }
 0x299   :  { %p524_p12 = pnand %p523_p11, %p517_p8 }
 0x29b   :  { %527 = shalt.err (!%p524_p12)
}
 0x29c   :  { %s528_s13 = scalar_lea.hbm %s699_s10, 128 }
 0x29d   :  { %p529_p13 = scmp.ne.s32.totalorder %s699_s10, %s528_s13  ;;  %p532_p0 = scmp.lt.u32.totalorder %s528_s13, %s699_s10 }
 0x29f   :  { %p534_p1 = pnand %p532_p0, %p529_p13 }
 0x2a1   :  { %537 = shalt.err (!%p534_p1)
}
 0x2a2   :  { %398 = dma.vmem_to_hbm [thread:$0]  %s396_s23, 128, %s699_s10, [#allocation5]  }
 0x2a3   :  { %538 = dma.done.wait [#allocation3], 128  }
 0x2a4   :  { %539 = vsyncadd [#allocation3], 4294967168 }
 0x2a5   :  { %540 = dma.done.wait [#allocation5], 128  }
 0x2a6   :  { %541 = vsyncadd [#allocation5], 4294967168 }
 0x2a7   :  { %405 = vsyncpa [#allocation3], 1 }
 0x2a8   :  { %406 = vsyncpa [#allocation5], 1 }

</bundles_post_ra>
